<compile_context>
chip_gen: v5e
topology: v5e:2x2
jax: 0.10.0
libtpu: 0.0.40
codegen_flags: <defaults>
</compile_context>

<pallas_src>
import jax
import jax.numpy as jnp
from jax import lax
from jax.experimental import pallas as pl
from jax.experimental.pallas import tpu as pltpu

HIDDEN = 16
IN_FEAT = 1
NGATES = 4                       # packed gate order [i, f, g, o]
GATES = NGATES * HIDDEN          # 64


def _pick_unroll(T):
    """Unroll fully for short sequences, otherwise a divisor of T."""
    if T <= 32:
        return True
    for u in (8, 4, 2):
        if T % u == 0:
            return u
    return 1


def _lstm_seq_kernel(x_ref, wih_ref, whh_ref, b_ref, h0_ref, c0_ref,
                     h_out_ref, c_out_ref, gx_scr):
    """Whole-sequence LSTM: everything VMEM-resident, T steps in-kernel."""
    T = x_ref.shape[0]

    # x-side affine (no dependence on h) hoisted off the recurrence:
    # (T, B, 1) * (1, 1, 4H) + (1, 1, 4H) -> (T, B, 4H), one vectorized op.
    gx_scr[...] = x_ref[...] * wih_ref[...][None] + b_ref[...][None]

    whh = whh_ref[...]            # (H, 4H), loop-invariant -> load once

    def step(t, carry):
        h, c = carry
        # One MXU push per step: (B, H) @ (H, 4H) -> packed gate pre-acts.
        pre = gx_scr[t] + jnp.dot(h, whh, preferred_element_type=jnp.float32)
        # One packed 64-lane EUP chain: g's block was pre-scaled by 2 at
        # pack time, so tanh(z) = 2*sigmoid(2z) - 1.
        s = jax.nn.sigmoid(pre)
        i_g = s[:, 0 * HIDDEN:1 * HIDDEN]
        f_g = s[:, 1 * HIDDEN:2 * HIDDEN]
        g_g = 2.0 * s[:, 2 * HIDDEN:3 * HIDDEN] - 1.0
        o_g = s[:, 3 * HIDDEN:4 * HIDDEN]
        c_new = i_g * g_g + f_g * c            # modules 19 / 20 / 21
        h_new = o_g * jnp.tanh(c_new)          # modules 22 / 23
        # Direct dynamic-index stores into the resident output blocks.
        h_out_ref[t] = h_new
        c_out_ref[t] = c_new
        return h_new, c_new

    lax.fori_loop(0, T, step, (h0_ref[...], c0_ref[...]),
                  unroll=_pick_unroll(T))


def _pack_params(w_ih, w_hh, b_ih):
    """Pack PyTorch-layout weights along lanes; pre-scale the g block by 2."""
    scale = jnp.concatenate([jnp.ones((2 * HIDDEN,), jnp.float32),
                             jnp.full((HIDDEN,), 2.0, jnp.float32),
                             jnp.ones((HIDDEN,), jnp.float32)])      # (4H,)
    wih = jnp.asarray(w_ih, jnp.float32).T * scale[None, :]          # (1, 4H)
    whh = jnp.asarray(w_hh, jnp.float32).T * scale[None, :]          # (H, 4H)
    b = (jnp.asarray(b_ih, jnp.float32) * scale)[None, :]            # (1, 4H)
    return wih, whh, b


def lstm_sequence_forward(xs, h0, c0, w_ih, w_hh, b_ih):
    """Fused multi-timestep LSTM layer.

    xs: (T, B, 1), h0/c0: (B, 16)
    w_ih: (64, 1), w_hh: (64, 16), b_ih: (64,)  -- gate order [i, f, g, o]
    Returns (h_seq, c_seq), each (T, B, 16); step t matches the PyTorch
    module's (output_module_23, output_module_21) applied recurrently.
    """
    T, B, _ = xs.shape
    wih, whh, b = _pack_params(w_ih, w_hh, b_ih)

    cost = pl.CostEstimate(
        flops=int(T * (2 * B * HIDDEN * GATES      # h @ W_hh
                       + 2 * B * GATES             # gates_x precompute
                       + 14 * B * HIDDEN)),        # elementwise update
        transcendentals=int(T * 2 * B * (GATES + HIDDEN)),  # exp+recip per sig/tanh
        bytes_accessed=int(4 * (T * B * IN_FEAT + GATES * (HIDDEN + 2)
                                + 2 * B * HIDDEN + 2 * T * B * HIDDEN)),
    )

    h_seq, c_seq = pl.pallas_call(
        _lstm_seq_kernel,
        out_shape=(jax.ShapeDtypeStruct((T, B, HIDDEN), jnp.float32),
                   jax.ShapeDtypeStruct((T, B, HIDDEN), jnp.float32)),
        grid=(1,),
        in_specs=[
            pl.BlockSpec((T, B, IN_FEAT), lambda i: (0, 0, 0)),   # xs (resident)
            pl.BlockSpec((1, GATES), lambda i: (0, 0)),           # W_ih packed
            pl.BlockSpec((HIDDEN, GATES), lambda i: (0, 0)),      # W_hh packed
            pl.BlockSpec((1, GATES), lambda i: (0, 0)),           # bias packed
            pl.BlockSpec((B, HIDDEN), lambda i: (0, 0)),          # h0
            pl.BlockSpec((B, HIDDEN), lambda i: (0, 0)),          # c0
        ],
        out_specs=(pl.BlockSpec((T, B, HIDDEN), lambda i: (0, 0, 0)),
                   pl.BlockSpec((T, B, HIDDEN), lambda i: (0, 0, 0))),
        scratch_shapes=[pltpu.VMEM((T, B, GATES), jnp.float32)],  # gates_x
        compiler_params=pltpu.CompilerParams(
            dimension_semantics=("arbitrary",)),                  # serial recurrence
        cost_estimate=cost,
    )(xs.astype(jnp.float32), wih, whh, b,
      h0.astype(jnp.float32), c0.astype(jnp.float32))

    return h_seq, c_seq


def lstm_cell_forward(x, h, c, w_ih, w_hh, b_ih):
    """Single-step forward, exactly matching the PyTorch module (T=1)."""
    h_seq, c_seq = lstm_sequence_forward(x[None], h, c, w_ih, w_hh, b_ih)
    return h_seq[0], c_seq[0]


# ---------------------------------------------------------------------------
# Pure-JAX reference
# ---------------------------------------------------------------------------
def _cell_reference(x, h, c, w_ih, w_hh, b_ih):
    gates = x @ w_ih.T + b_ih[None, :] + h @ w_hh.T
    i_g = jax.nn.sigmoid(gates[:, 0 * HIDDEN:1 * HIDDEN])
    f_g = jax.nn.sigmoid(gates[:, 1 * HIDDEN:2 * HIDDEN])
    g_g = jnp.tanh(gates[:, 2 * HIDDEN:3 * HIDDEN])
    o_g = jax.nn.sigmoid(gates[:, 3 * HIDDEN:4 * HIDDEN])
    c_new = i_g * g_g + f_g * c
    h_new = o_g * jnp.tanh(c_new)
    return h_new, c_new


if __name__ == "__main__":
    key = jax.random.PRNGKey(0)
    kx, kh, kc, kwi, kwh, kb, kxs = jax.random.split(key, 7)

    B, T = 8, 8
    x = jax.random.normal(kx, (B, IN_FEAT), jnp.float32)     # args[0]
    h = jax.random.normal(kh, (B, HIDDEN), jnp.float32)      # args[1]
    c = jax.random.normal(kc, (B, HIDDEN), jnp.float32)      # args[2]
    xs = jax.random.normal(kxs, (T, B, IN_FEAT), jnp.float32)

    bound_ih = 1.0 / (IN_FEAT ** 0.5)
    bound_hh = 1.0 / (HIDDEN ** 0.5)
    w_ih = jax.random.uniform(kwi, (4 * HIDDEN, IN_FEAT), jnp.float32,
                              -bound_ih, bound_ih)
    w_hh = jax.random.uniform(kwh, (4 * HIDDEN, HIDDEN), jnp.float32,
                              -bound_hh, bound_hh)
    b_ih = jax.random.uniform(kb, (4 * HIDDEN,), jnp.float32,
                              -bound_ih, bound_ih)

    # --- single-step (matches the PyTorch module exactly) ------------------
    h_new, c_new = lstm_cell_forward(x, h, c, w_ih, w_hh, b_ih)
    jax.block_until_ready((h_new, c_new))
    h_ref, c_ref = _cell_reference(x, h, c, w_ih, w_hh, b_ih)
    assert jnp.allclose(h_new, h_ref, atol=1e-5), "h mismatch (single step)"
    assert jnp.allclose(c_new, c_ref, atol=1e-5), "c mismatch (single step)"

    # --- fused T-step version (the performance-critical path) --------------
    h_seq, c_seq = lstm_sequence_forward(xs, h, c, w_ih, w_hh, b_ih)
    jax.block_until_ready((h_seq, c_seq))
    hr, cr = h, c
    for t in range(T):
        hr, cr = _cell_reference(xs[t], hr, cr, w_ih, w_hh, b_ih)
        assert jnp.allclose(h_seq[t], hr, atol=1e-5), f"h mismatch at t={t}"
        assert jnp.allclose(c_seq[t], cr, atol=1e-5), f"c mismatch at t={t}"

    print("KERNEL_OK")
</pallas_src>

<mosaic_0001>
module attributes {stable_mosaic.version = 11 : i64} {
  func.func @_lstm_seq_kernel(%arg0: i32, %arg1: memref<1x8x1xf32, #tpu.memory_space<vmem>>, %arg2: memref<1x64xf32, #tpu.memory_space<vmem>>, %arg3: memref<16x64xf32, #tpu.memory_space<vmem>>, %arg4: memref<1x64xf32, #tpu.memory_space<vmem>>, %arg5: memref<8x16xf32, #tpu.memory_space<vmem>>, %arg6: memref<8x16xf32, #tpu.memory_space<vmem>>, %arg7: memref<1x8x16xf32, #tpu.memory_space<vmem>>, %arg8: memref<1x8x16xf32, #tpu.memory_space<vmem>>, %arg9: memref<1x8x64xf32, #tpu.memory_space<vmem>>) attributes {dimension_semantics = [#tpu.dimension_semantics<arbitrary>], iteration_bounds = array<i64: 1>, scalar_prefetch = 0 : i64, scratch_operands = 1 : i64, tpu.core_type = #tpu.core_type<tc>, window_params = [{pipeline_mode = #tpu.pipeline_mode<synchronous>, transform_indices = @transform_0, window_bounds = array<i64: 1, 8, 1>}, {pipeline_mode = #tpu.pipeline_mode<synchronous>, transform_indices = @transform_1, window_bounds = array<i64: 1, 64>}, {pipeline_mode = #tpu.pipeline_mode<synchronous>, transform_indices = @transform_2, window_bounds = array<i64: 16, 64>}, {pipeline_mode = #tpu.pipeline_mode<synchronous>, transform_indices = @transform_3, window_bounds = array<i64: 1, 64>}, {pipeline_mode = #tpu.pipeline_mode<synchronous>, transform_indices = @transform_4, window_bounds = array<i64: 8, 16>}, {pipeline_mode = #tpu.pipeline_mode<synchronous>, transform_indices = @transform_5, window_bounds = array<i64: 8, 16>}, {pipeline_mode = #tpu.pipeline_mode<synchronous>, transform_indices = @transform_6, window_bounds = array<i64: 1, 8, 16>}, {pipeline_mode = #tpu.pipeline_mode<synchronous>, transform_indices = @transform_7, window_bounds = array<i64: 1, 8, 16>}]} {
    %c0 = arith.constant 0 : index
    %c0_0 = arith.constant 0 : index
    %c0_1 = arith.constant 0 : index
    %0 = vector.load %arg1[%c0, %c0_0, %c0_1] : memref<1x8x1xf32, #tpu.memory_space<vmem>>, vector<1x8x1xf32>
    %c0_2 = arith.constant 0 : index
    %c0_3 = arith.constant 0 : index
    %1 = vector.load %arg2[%c0_2, %c0_3] : memref<1x64xf32, #tpu.memory_space<vmem>>, vector<1x64xf32>
    %2 = vector.shape_cast %1 : vector<1x64xf32> to vector<1x1x64xf32>
    %3 = vector.broadcast %0 : vector<1x8x1xf32> to vector<1x8x64xf32>
    %4 = vector.broadcast %2 : vector<1x1x64xf32> to vector<1x8x64xf32>
    %5 = arith.mulf %3, %4 : vector<1x8x64xf32>
    %c0_4 = arith.constant 0 : index
    %c0_5 = arith.constant 0 : index
    %6 = vector.load %arg4[%c0_4, %c0_5] : memref<1x64xf32, #tpu.memory_space<vmem>>, vector<1x64xf32>
    %7 = vector.shape_cast %6 : vector<1x64xf32> to vector<1x1x64xf32>
    %8 = vector.broadcast %7 : vector<1x1x64xf32> to vector<1x8x64xf32>
    %9 = arith.addf %5, %8 : vector<1x8x64xf32>
    %c0_6 = arith.constant 0 : index
    %c0_7 = arith.constant 0 : index
    %c0_8 = arith.constant 0 : index
    %10 = vector.load %arg9[%c0_6, %c0_7, %c0_8] : memref<1x8x64xf32, #tpu.memory_space<vmem>>, vector<1x8x64xf32>
    tpu.vector_store %arg9[%c0_6, %c0_7, %c0_8], %9 {strides = array<i32>} : memref<1x8x64xf32, #tpu.memory_space<vmem>>, vector<1x8x64xf32>,
    %c0_9 = arith.constant 0 : index
    %c0_10 = arith.constant 0 : index
    %11 = vector.load %arg3[%c0_9, %c0_10] : memref<16x64xf32, #tpu.memory_space<vmem>>, vector<16x64xf32>
    %c0_11 = arith.constant 0 : index
    %c0_12 = arith.constant 0 : index
    %12 = vector.load %arg5[%c0_11, %c0_12] : memref<8x16xf32, #tpu.memory_space<vmem>>, vector<8x16xf32>
    %c0_13 = arith.constant 0 : index
    %c0_14 = arith.constant 0 : index
    %13 = vector.load %arg6[%c0_13, %c0_14] : memref<8x16xf32, #tpu.memory_space<vmem>>, vector<8x16xf32>
    %c0_i32 = arith.constant 0 : i32
    %14 = arith.index_cast %c0_i32 : i32 to index
    %c0_15 = arith.constant 0 : index
    %c0_16 = arith.constant 0 : index
    %15 = vector.load %arg9[%14, %c0_15, %c0_16] : memref<1x8x64xf32, #tpu.memory_space<vmem>>, vector<1x8x64xf32>
    %16 = vector.shape_cast %15 : vector<1x8x64xf32> to vector<8x64xf32>
    %cst = arith.constant dense<0.000000e+00> : vector<8x64xf32>
    %17 = tpu.matmul %12, %11, %cst {dimension_numbers = #tpu.dot_dimension_numbers<[1], [0], [0], [1], [0, 0, 1, 1], [], []>} : vector<8x16xf32>, vector<16x64xf32>, vector<8x64xf32> -> vector<8x64xf32>
    %18 = arith.addf %16, %17 : vector<8x64xf32>
    %19 = arith.negf %18 : vector<8x64xf32>
    %20 = math.exp %19 : vector<8x64xf32>
    %cst_17 = arith.constant 1.000000e+00 : f32
    %21 = vector.broadcast %cst_17 : f32 to vector<8x64xf32>
    %22 = arith.addf %21, %20 : vector<8x64xf32>
    %23 = arith.divf %21, %22 : vector<8x64xf32>
    %24 = vector.extract_strided_slice %23 {offsets = [0, 0], sizes = [8, 16], strides = [1, 1]} : vector<8x64xf32> to vector<8x16xf32>
    %25 = vector.extract_strided_slice %23 {offsets = [0, 16], sizes = [8, 16], strides = [1, 1]} : vector<8x64xf32> to vector<8x16xf32>
    %26 = vector.extract_strided_slice %23 {offsets = [0, 32], sizes = [8, 16], strides = [1, 1]} : vector<8x64xf32> to vector<8x16xf32>
    %cst_18 = arith.constant 2.000000e+00 : f32
    %27 = vector.broadcast %cst_18 : f32 to vector<8x16xf32>
    %28 = arith.mulf %27, %26 : vector<8x16xf32>
    %cst_19 = arith.constant 1.000000e+00 : f32
    %29 = vector.broadcast %cst_19 : f32 to vector<8x16xf32>
    %30 = arith.subf %28, %29 : vector<8x16xf32>
    %31 = vector.extract_strided_slice %23 {offsets = [0, 48], sizes = [8, 16], strides = [1, 1]} : vector<8x64xf32> to vector<8x16xf32>
    %32 = arith.mulf %24, %30 : vector<8x16xf32>
    %33 = arith.mulf %25, %13 : vector<8x16xf32>
    %34 = arith.addf %32, %33 : vector<8x16xf32>
    %35 = math.tanh %34 : vector<8x16xf32>
    %36 = arith.mulf %31, %35 : vector<8x16xf32>
    %37 = arith.index_cast %c0_i32 : i32 to index
    %c0_20 = arith.constant 0 : index
    %c0_21 = arith.constant 0 : index
    %38 = vector.load %arg7[%37, %c0_20, %c0_21] : memref<1x8x16xf32, #tpu.memory_space<vmem>>, vector<1x8x16xf32>
    %39 = vector.shape_cast %38 : vector<1x8x16xf32> to vector<8x16xf32>
    %40 = vector.shape_cast %36 : vector<8x16xf32> to vector<1x8x16xf32>
    tpu.vector_store %arg7[%37, %c0_20, %c0_21], %40 {strides = array<i32>} : memref<1x8x16xf32, #tpu.memory_space<vmem>>, vector<1x8x16xf32>,
    %41 = arith.index_cast %c0_i32 : i32 to index
    %c0_22 = arith.constant 0 : index
    %c0_23 = arith.constant 0 : index
    %42 = vector.load %arg8[%41, %c0_22, %c0_23] : memref<1x8x16xf32, #tpu.memory_space<vmem>>, vector<1x8x16xf32>
    %43 = vector.shape_cast %42 : vector<1x8x16xf32> to vector<8x16xf32>
    %44 = vector.shape_cast %34 : vector<8x16xf32> to vector<1x8x16xf32>
    tpu.vector_store %arg8[%41, %c0_22, %c0_23], %44 {strides = array<i32>} : memref<1x8x16xf32, #tpu.memory_space<vmem>>, vector<1x8x16xf32>,
    %c1_i32 = arith.constant 1 : i32
    return
  }
  func.func @transform_0(%arg0: i32) -> (i32, i32, i32) {
    %c0_i32 = arith.constant 0 : i32
    %c0_i32_0 = arith.constant 0 : i32
    %c0_i32_1 = arith.constant 0 : i32
    %c0_i32_2 = arith.constant 0 : i32
    return %c0_i32, %c0_i32_0, %c0_i32_1 : i32, i32, i32
  }
  func.func @transform_1(%arg0: i32) -> (i32, i32) {
    %c0_i32 = arith.constant 0 : i32
    %c0_i32_0 = arith.constant 0 : i32
    %c0_i32_1 = arith.constant 0 : i32
    return %c0_i32, %c0_i32_0 : i32, i32
  }
  func.func @transform_2(%arg0: i32) -> (i32, i32) {
    %c0_i32 = arith.constant 0 : i32
    %c0_i32_0 = arith.constant 0 : i32
    %c0_i32_1 = arith.constant 0 : i32
    return %c0_i32, %c0_i32_0 : i32, i32
  }
  func.func @transform_3(%arg0: i32) -> (i32, i32) {
    %c0_i32 = arith.constant 0 : i32
    %c0_i32_0 = arith.constant 0 : i32
    %c0_i32_1 = arith.constant 0 : i32
    return %c0_i32, %c0_i32_0 : i32, i32
  }
  func.func @transform_4(%arg0: i32) -> (i32, i32) {
    %c0_i32 = arith.constant 0 : i32
    %c0_i32_0 = arith.constant 0 : i32
    %c0_i32_1 = arith.constant 0 : i32
    return %c0_i32, %c0_i32_0 : i32, i32
  }
  func.func @transform_5(%arg0: i32) -> (i32, i32) {
    %c0_i32 = arith.constant 0 : i32
    %c0_i32_0 = arith.constant 0 : i32
    %c0_i32_1 = arith.constant 0 : i32
    return %c0_i32, %c0_i32_0 : i32, i32
  }
  func.func @transform_6(%arg0: i32) -> (i32, i32, i32) {
    %c0_i32 = arith.constant 0 : i32
    %c0_i32_0 = arith.constant 0 : i32
    %c0_i32_1 = arith.constant 0 : i32
    %c0_i32_2 = arith.constant 0 : i32
    return %c0_i32, %c0_i32_0, %c0_i32_1 : i32, i32, i32
  }
  func.func @transform_7(%arg0: i32) -> (i32, i32, i32) {
    %c0_i32 = arith.constant 0 : i32
    %c0_i32_0 = arith.constant 0 : i32
    %c0_i32_1 = arith.constant 0 : i32
    %c0_i32_2 = arith.constant 0 : i32
    return %c0_i32, %c0_i32_0, %c0_i32_1 : i32, i32, i32
  }
}

</mosaic_0001>

<bundles_post_ra>
// kernel: tpu_custom_call.1
= control target key start
LH: loop header
LB: loop body
LE: loop exit
PB: predicated region body
PF: predicated region fallthrough
CT: control target
= control target key end

     0   :  { %13 = vsyncpa [#allocation4], 0  ;;  %s394_s0 = inlined_call_operand.vmem [shape: f32[1,8,1], index: 0, kind: input, shape index: {}]   ;;  %s395_s1 = inlined_call_operand.vmem [shape: f32[1,64], index: 1, kind: input, shape index: {}]   ;;  %s396_s2 = inlined_call_operand.hbm [shape: f32[16,64], index: 2, kind: input, shape index: {}]   ;;  %s397_s3 = inlined_call_operand.vmem [shape: f32[1,64], index: 3, kind: input, shape index: {}]   ;;  %s398_s4 = inlined_call_operand.vmem [shape: f32[8,16], index: 4, kind: input, shape index: {}]   ;;  %s399_s5 = inlined_call_operand.hbm [shape: f32[8,16], index: 5, kind: input, shape index: {}]   ;;  %s400_s6 = inlined_call_operand.hbm [shape: f32[1,8,16], index: 6, kind: output, shape index: {0}]   ;;  %s401_s7 = inlined_call_operand.hbm [shape: f32[1,8,16], index: 7, kind: output, shape index: {1}]  }
   0x1   :  { %14 = vsyncpa [#allocation7], 0 }
   0x2   :  { %15 = vsyncpa [#allocation5], 0 }
   0x3   :  { %16 = vsyncpa [#allocation10], 0  ;;  %s25_s26 = sshll.u32 %s396_s2, 4  ;;  %s315_s27 = smov [#allocation3]   ;;  %s26_s26 = int_to_ptr.hbm [resolvable:$true] %s25_s26 }
   0x4   :  { %s27_s28 = sshll.u32 %s315_s27, 4  ;;  %s43_s8 = sshll.u32 %s399_s5, 4  ;;  %s28_s28 = int_to_ptr.vmem [resolvable:$true] %s27_s28  ;;  %s44_s8 = int_to_ptr.hbm [resolvable:$true] %s43_s8 }
   0x5   :  { %s316_s9 = smov 128   ;;  %s317_s10 = smov 8  }
   0x6   :  { %33 = dma.hbm_to_vmem [thread:$0]  %s26_s26, 256, %s28_s28, [#allocation4], %s316_s9, %s316_s9, %s317_s10  }
   0x7   :  { %s318_s11 = smov [#allocation6]  }
   0x8   :  { %s45_s12 = sshll.u32 %s318_s11, 4  ;;  %s46_s12 = int_to_ptr.vmem [resolvable:$true] %s45_s12 }
   0x9   :  { %48 = dma.hbm_to_vmem [thread:$0]  %s44_s8, 128, %s46_s12, [#allocation7]  }
   0xa   :  { %307 = dma.done.wait [#allocation4], 256  }
   0xb   :  { %308 = vsyncadd [#allocation4], 4294967040 }
   0xc   :  { %309 = dma.done.wait [#allocation7], 128  }
   0xd   :  { %310 = vsyncadd [#allocation7], 4294967168  ;;  %v319_v0 = vmov 0   ;;  %v76_v1 = vld [vmem:[#allocation3 + $0x8] sm:$0xff]  ;;  %v75_v2 = vld [vmem:[#allocation3] sm:$0xff]  ;;  %vm80_vm0 = vcmask 130048  }
   0xe   :  { %202 = vset.pattern.permute.xlu0 %v319_v0  ;;  %v57_v3 = vld [vmem:[%s394_s0] sm:$0xff]  ;;  %98 = vmatpush.msra.mxu0 %v76_v1  ;;  %v78_v5 = vld [vmem:[#allocation6] sm:$0xff]  ;;  %s320_s15 = smov 16   ;;  %vm73_vm1 = vcmask 523264   ;;  %s321_s0 = smov 96  }
   0xf   :  { %61 = vperm.xlu0 %202, %v57_v3   ;;  %v77_v4 = vld [vmem:[%s398_s4] sm:$0xff]  ;;  %s324_s4 = smov [#allocation9]   ;;  %s171_s23 = sshll.u32 %s401_s7, 4  ;;  %s172_s23 = int_to_ptr.hbm [resolvable:$true] %s171_s23 }
  0x10   :  { %99 = vmatpush.msra.mxu0 %v75_v2  ;;  %v203_v6 = vld [vmem:[%s395_s1] ss:$0 sm:$0xff]  ;;  %s322_s1 = smov 112   ;;  %s169_s20 = sshll.u32 %s324_s4, 4  ;;  %s170_s20 = int_to_ptr.vmem [resolvable:$true] %s169_s20 }
  0x11   :  { %187 = vmatmul.msk.f32.vlgmr.msra.gmra.mxu0 %vm80_vm0, %v77_v4  ;;  %v204_v7 = vld [vmem:[%s397_s3] ss:$0 sm:$0xff]  ;;  %s323_s3 = smov 48   ;;  %s325_s24 = smov 80  }
  0x12   :  { %s326_s25 = smov [#allocation8]   ;;  %s160_s29 = sshll.u32 %s400_s6, 4  ;;  %s161_s29 = int_to_ptr.hbm [resolvable:$true] %s160_s29 }
  0x13   :  { %s158_s26 = sshll.u32 %s326_s25, 4  ;;  %s159_s26 = int_to_ptr.vmem [resolvable:$true] %s158_s26 }
  0x17   :  { %132 = vrot.lane.b32.xlu0 %v78_v5, %s320_s15 }
  0x81   :  { %v62_v8 = vpop.permute.xlu0 %61 }
  0x82   :  { %v67_v9 = vmul.f32 %v203_v6, %v62_v8 }
  0x84   :  { %v72_v10 = vadd.f32 %v204_v7, %v67_v9 }
  0x86   :  { %74 = vst.msk [vmem:[#allocation2] sm:$0xff] %vm73_vm1, %v72_v10 }
  0x89   :  { %v133_v29 = vpop.permute.xlu0 %132 }
  0x8d   :  { %v79_v11 = vld [vmem:[#allocation2] sm:$0xff] }
  0x8e   :  { %v101_v12 = vpop.f32.mrf.mxu0 }
  0x8f   :  { %v104_v13 = vadd.f32 %v101_v12, %v79_v11 }
  0x91   :  { %v188_v14 = vmul.f32 -1.442695, %v104_v13 }
  0x93   :  { %205 = vpow2.f32 %v188_v14 }
  0x99   :  { %v206_v15 = vpop.eup %205 }
  0x9a   :  { %v108_v16 = vadd.f32 1.0, %v206_v15 }
  0x9c   :  { %207 = vrcp.f32 %v108_v16  ;;  %v120_v20 = vand.u32 2147483648, %v108_v16  ;;  %v118_v22 = vand.u32 2147483647, %v108_v16  ;;  %vm114_vm3 = vweird.f32 %v108_v16 }
  0x9e   :  { %v121_v24 = vor.u32 1.1754944e-38, %v120_v20  ;;  %vm119_vm5 = vcmp.eq.f32.partialorder %v118_v22, 8.507059e+37 }
  0xa2   :  { %v208_v17 = vpop.eup %207 }
  0xa3   :  { %v110_v18 = vmul.f32 %v208_v17, %v108_v16  ;;  %vm115_vm2 = vweird.f32 %v208_v17 }
  0xa4   :  { %vm116_vm4 = vmor %vm114_vm3, %vm115_vm2 }
  0xa5   :  { %v111_v19 = vsub.f32 1.0, %v110_v18 }
  0xa7   :  { %v112_v21 = vmul.f32 %v208_v17, %v111_v19 }
  0xa9   :  { %v113_v23 = vadd.f32 %v208_v17, %v112_v21 }
  0xab   :  { %v117_v25 = vsel %vm116_vm4, %v208_v17, %v113_v23 }
  0xac   :  { %v122_v26 = vsel %vm119_vm5, %v121_v24, %v117_v25 }
  0xad   :  { %v124_v27 = vmul.f32 2.0, %v122_v26  ;;  %v135_v30 = vmul.f32 %v133_v29, %v122_v26 }
  0xaf   :  { %v189_v28 = vadd.f32 -1.0, %v124_v27 }
  0xb1   :  { %127 = vrot.lane.b32.xlu1 %v189_v28, %s321_s0 }
  0xb9   :  { %137 = vrot.lane.b32.xlu1 %v135_v30, %s322_s1 }
 0x123   :  { %v128_v31 = vpop.permute.xlu1 %127 }
 0x124   :  { %v130_v32 = vmul.f32 %v128_v31, %v122_v26 }
 0x12b   :  { %v138_v33 = vpop.permute.xlu1 %137 }
 0x12c   :  { %v140_v34 = vadd.f32 %v138_v33, %v130_v32 }
 0x12e   :  { %209 = vtanh.f32 %v140_v34  ;;  %152 = vst.msk [vmem:[#allocation9] sm:$0xff] %vm80_vm0, %v140_v34 }
 0x12f   :  { %174 = dma.vmem_to_hbm [thread:$0]  %s170_s20, 128, %s172_s23, [#allocation10]  }
 0x134   :  { %v210_v35 = vpop.eup %209 }
 0x135   :  { %143 = vrot.lane.b32.xlu2 %v210_v35, %s323_s3 }
 0x18f   :  { %v144_v36 = vpop.permute.xlu2 %143 }
 0x190   :  { %v146_v37 = vmul.f32 %v144_v36, %v122_v26 }
 0x192   :  { %148 = vrot.lane.b32.xlu2 %v146_v37, %s325_s24 }
 0x1ec   :  { %v149_v38 = vpop.permute.xlu2 %148 }
 0x1ed   :  { %151 = vst.msk [vmem:[#allocation8] sm:$0xff] %vm80_vm0, %v149_v38 }
 0x1ee   :  { %163 = dma.vmem_to_hbm [thread:$0]  %s159_s26, 128, %s161_s29, [#allocation5]  }
 0x1ef   :  { %311 = dma.done.wait [#allocation5], 128  }
 0x1f0   :  { %312 = vsyncadd [#allocation5], 4294967168 }
 0x1f1   :  { %313 = dma.done.wait [#allocation10], 128  }
 0x1f2   :  { %314 = vsyncadd [#allocation10], 4294967168 }
 0x1f3   :  { %183 = vsyncpa [#allocation4], 1 }
 0x1f4   :  { %184 = vsyncpa [#allocation7], 1 }
 0x1f5   :  { %185 = vsyncpa [#allocation5], 1 }
 0x1f6   :  { %186 = vsyncpa [#allocation10], 1 }

</bundles_post_ra>
